<compile_context>
chip_gen: v7x
topology: tpu7x:2x2x1
jax: 0.10.0
libtpu: 0.0.40
codegen_flags: <defaults>
</compile_context>

<pallas_src>
import functools

import jax
import jax.numpy as jnp
from jax import lax
from jax.experimental import pallas as pl
from jax.experimental.pallas import tpu as pltpu


_LANE = 128
_MAX_TILE = 2048   # max lanes per spatial tile (85-86% of HBM roofline already)
_N_ACC = 4         # interleaved partial accumulators (breaks the serial add chain)


def _bce_kernel(p_ref, t_ref, o_ref, acc_ref, *, s_true, n_s, s_rem):
    """One (row-block r, spatial-tile s) grid step.

    p_ref/t_ref: (R, ts) logits / targets (native dtype, cast in-kernel).
    o_ref:       (R, 1) per-row output block (written once, at the last s).
    acc_ref:     (R, 128) f32 lane-folded partial sums, persistent across s.
    """
    r_blk, ts = p_ref.shape
    n_chunks = ts // _LANE
    s = pl.program_id(1)

    @pl.when(s == 0)
    def _init():
        acc_ref[...] = jnp.zeros_like(acc_ref)

    def chunk_loss(k, valid):
        # One lane-aligned 128-wide chunk, computed entirely in vregs.
        lo = k * _LANE
        x = p_ref[:, lo:lo + _LANE].astype(jnp.float32)
        y = t_ref[:, lo:lo + _LANE].astype(jnp.float32)
        # numerically stable BCE-with-logits (same as nn.BCEWithLogitsLoss):
        #   max(x, 0) - x*y + log1p(exp(-|x|))
        l = jnp.maximum(x, 0.0) - x * y + jnp.log1p(jnp.exp(-jnp.abs(x)))
        if valid < _LANE:
            # Tail lanes of the last block hold unspecified data -> mask BEFORE
            # accumulation (select does not propagate NaN/Inf from dead lanes).
            lane = lax.broadcasted_iota(jnp.int32, l.shape, 1)
            l = jnp.where(lane < valid, l, 0.0)
        return l

    def accumulate(valids):
        # valids: static per-chunk valid-lane counts; fully-invalid chunks are
        # skipped, and the remaining chunks feed _N_ACC interleaved partials.
        active = [(k, v) for k, v in enumerate(valids) if v > 0]
        n_par = min(_N_ACC, len(active))
        parts = [None] * n_par
        for i, (k, v) in enumerate(active):
            l = chunk_loss(k, v)
            slot = i % n_par
            parts[slot] = l if parts[slot] is None else parts[slot] + l
        total = parts[0]
        for pp in parts[1:]:
            total = total + pp
        acc_ref[...] += total

    full_valids = [_LANE] * n_chunks
    if s_rem == ts:
        # S divides evenly into tiles: single unmasked path.
        accumulate(full_valids)
    else:
        last_valids = [max(0, min(_LANE, s_rem - k * _LANE))
                       for k in range(n_chunks)]
        if n_s > 1:
            @pl.when(s < n_s - 1)
            def _full_tiles():
                accumulate(full_valids)

        @pl.when(s == n_s - 1)
        def _last_tile():
            accumulate(last_valids)

    @pl.when(s == n_s - 1)
    def _finalize():
        # One cross-lane (XLU) reduce per row block + 1/S scale, single store.
        row_sum = jnp.sum(acc_ref[...], axis=-1, keepdims=True)     # (R, 1)
        o_ref[...] = (row_sum * jnp.float32(1.0 / s_true)).astype(o_ref.dtype)


def _choose_row_tile(bc):
    """Rows per block: multiple of 8 (packed sublanes); >=2 row blocks when
    possible so the 'parallel' axis feeds both TensorCores on v7x."""
    bc8 = pl.cdiv(bc, 8) * 8
    if bc8 <= 8:
        return 8
    half = (bc8 // 2 // 8) * 8
    return max(8, min(32, half))


def per_channel_bce(predict, target):
    """(B, C, *spatial) logits/targets -> (B, C) per-channel mean BCE-with-logits."""
    B, C = predict.shape[0], predict.shape[1]
    S = 1
    for d in predict.shape[2:]:
        S *= d
    BC = B * C
    # Native dtype all the way to VMEM; cast happens inside the kernel.
    # (Callers may pass bf16/int8 targets to cut HBM traffic; no kernel change.)
    p = predict.reshape(BC, S)
    t = target.reshape(BC, S)

    R = _choose_row_tile(BC)
    ts = min(pl.cdiv(S, _LANE) * _LANE, _MAX_TILE)
    n_r = pl.cdiv(BC, R)
    n_s = pl.cdiv(S, ts)
    s_rem = S - (n_s - 1) * ts        # valid lanes in the last spatial tile

    kernel = functools.partial(_bce_kernel, s_true=S, n_s=n_s, s_rem=s_rem)

    out = pl.pallas_call(
        kernel,
        out_shape=jax.ShapeDtypeStruct((BC, 1), jnp.float32),
        grid=(n_r, n_s),                      # reduction (spatial) axis innermost
        in_specs=[
            pl.BlockSpec((R, ts), lambda r, s: (r, s)),
            pl.BlockSpec((R, ts), lambda r, s: (r, s)),
        ],
        out_specs=pl.BlockSpec((R, 1), lambda r, s: (r, 0)),
        scratch_shapes=[pltpu.VMEM((R, _LANE), jnp.float32)],
        compiler_params=pltpu.CompilerParams(
            dimension_semantics=("parallel", "arbitrary"),
            vmem_limit_bytes=32 * 1024 * 1024),
        cost_estimate=pl.CostEstimate(
            flops=5 * BC * S,
            transcendentals=2 * BC * S,
            bytes_accessed=BC * S * (p.dtype.itemsize + t.dtype.itemsize)
            + BC * 4),
    )(p, t)
    return out.reshape(B, C)


def multi_bce_loss(predict, target, name, TEMPLATE):
    """JAX/Pallas equivalent of Multi_BCELoss.forward."""
    assert predict.shape[2:] == target.shape[2:], \
        'predict & target shape do not match'
    ch_loss = per_channel_bce(predict, target)      # (B, C)

    # String / template indexing has no Pallas equivalent -> plain Python glue.
    b_idx, c_idx = [], []
    B = predict.shape[0]
    for b in range(B):
        dataset_index = int(name[b][0:2])
        if dataset_index == 10:
            template_key = name[b][0:2] + '_' + name[b][17:19]
        elif dataset_index == 1:
            if int(name[b][-2:]) >= 60:
                template_key = '01_2'
            else:
                template_key = '01'
        else:
            template_key = name[b][0:2]
        for organ in TEMPLATE[template_key]:
            b_idx.append(b)
            c_idx.append(organ - 1)

    sel = ch_loss[jnp.array(b_idx), jnp.array(c_idx)]
    return jnp.sum(sel) / sel.shape[0]


def _reference(predict, target, name, TEMPLATE):
    """Pure-JAX reference mirroring the PyTorch forward, for a sanity check."""
    losses = []
    B = predict.shape[0]
    for b in range(B):
        dataset_index = int(name[b][0:2])
        if dataset_index == 10:
            template_key = name[b][0:2] + '_' + name[b][17:19]
        elif dataset_index == 1:
            template_key = '01_2' if int(name[b][-2:]) >= 60 else '01'
        else:
            template_key = name[b][0:2]
        for organ in TEMPLATE[template_key]:
            x = predict[b, organ - 1].astype(jnp.float32)
            y = target[b, organ - 1].astype(jnp.float32)
            l = jnp.maximum(x, 0.0) - x * y + jnp.log1p(jnp.exp(-jnp.abs(x)))
            losses.append(jnp.mean(l))
    losses = jnp.stack(losses)
    return jnp.sum(losses) / losses.shape[0]


if __name__ == "__main__":
    key = jax.random.PRNGKey(0)

    # Per-batch dataset names (same parsing rules as the PyTorch module) and
    # the organ-index template dictionary (1-based organ ids).
    name = ["01_BTCV_img0001_45",   # dataset 01, suffix 45 < 60 -> key '01'
            "02_TCIA_case_000012"]  # dataset 02 -> key '02'
    TEMPLATE = {
        '01':   [1, 2],
        '01_2': [1, 3],
        '02':   [2, 3, 4],
        '10_03': [1, 4],
    }

    # Case 1: lane-aligned spatial size (no masking path).
    k1, k2, k3, k4 = jax.random.split(key, 4)
    B, C, H, W = 2, 4, 16, 16
    predict = jax.random.normal(k1, (B, C, H, W), dtype=jnp.float32)
    target = (jax.random.uniform(k2, (B, C, H, W)) > 0.5).astype(jnp.float32)

    out = jax.block_until_ready(multi_bce_loss(predict, target, name, TEMPLATE))
    ref = jax.block_until_ready(_reference(predict, target, name, TEMPLATE))
    assert jnp.allclose(out, ref, rtol=1e-5, atol=1e-5), (out, ref)

    # Case 2: ragged spatial size (exercises partial last block + lane masking,
    # with no wrapper-side padding copy).
    H2, W2 = 10, 10
    predict2 = jax.random.normal(k3, (B, C, H2, W2), dtype=jnp.float32)
    target2 = (jax.random.uniform(k4, (B, C, H2, W2)) > 0.5).astype(jnp.float32)

    out2 = jax.block_until_ready(multi_bce_loss(predict2, target2, name, TEMPLATE))
    ref2 = jax.block_until_ready(_reference(predict2, target2, name, TEMPLATE))
    assert jnp.allclose(out2, ref2, rtol=1e-5, atol=1e-5), (out2, ref2)

    print("KERNEL_OK")
</pallas_src>

<mosaic_0001>
module attributes {stable_mosaic.version = 11 : i64} {
  func.func @_bce_kernel(%arg0: i32, %arg1: i32, %arg2: memref<8x256xf32, #tpu.memory_space<vmem>>, %arg3: memref<8x256xf32, #tpu.memory_space<vmem>>, %arg4: memref<8x1xf32, #tpu.memory_space<vmem>>, %arg5: memref<8x128xf32, #tpu.memory_space<vmem>>) attributes {dimension_semantics = [#tpu.dimension_semantics<parallel>, #tpu.dimension_semantics<arbitrary>], iteration_bounds = array<i64: 1, 1>, scalar_prefetch = 0 : i64, scratch_operands = 1 : i64, tpu.core_type = #tpu.core_type<tc>, window_params = [{transform_indices = @transform_0, window_bounds = array<i64: 8, 256>}, {transform_indices = @transform_1, window_bounds = array<i64: 8, 256>}, {transform_indices = @transform_2, window_bounds = array<i64: 8, 1>}]} {
    %c0_i32 = arith.constant 0 : i32
    %0 = arith.cmpi eq, %arg1, %c0_i32 : i32
    %1 = arith.extui %0 : i1 to i32
    %c0_i32_0 = arith.constant 0 : i32
    %2 = arith.cmpi ne, %1, %c0_i32_0 : i32
    scf.if %2 {
      %cst_16 = arith.constant 0.000000e+00 : f32
      %34 = vector.broadcast %cst_16 : f32 to vector<8x128xf32>
      %c0_17 = arith.constant 0 : index
      %c0_18 = arith.constant 0 : index
      %35 = vector.load %arg5[%c0_17, %c0_18] : memref<8x128xf32, #tpu.memory_space<vmem>>, vector<8x128xf32>
      tpu.vector_store %arg5[%c0_17, %c0_18], %34 {strides = array<i32>} : memref<8x128xf32, #tpu.memory_space<vmem>>, vector<8x128xf32>,
    } else {
    }
    %c0 = arith.constant 0 : index
    %c0_1 = arith.constant 0 : index
    %3 = vector.load %arg2[%c0, %c0_1] : memref<8x256xf32, #tpu.memory_space<vmem>>, vector<8x128xf32>
    %c0_2 = arith.constant 0 : index
    %c0_3 = arith.constant 0 : index
    %4 = vector.load %arg3[%c0_2, %c0_3] : memref<8x256xf32, #tpu.memory_space<vmem>>, vector<8x128xf32>
    %cst = arith.constant 0.000000e+00 : f32
    %5 = vector.broadcast %cst : f32 to vector<8x128xf32>
    %6 = arith.maximumf %3, %5 : vector<8x128xf32>
    %7 = arith.mulf %3, %4 : vector<8x128xf32>
    %8 = arith.subf %6, %7 : vector<8x128xf32>
    %9 = math.absf %3 : vector<8x128xf32>
    %cst_4 = arith.constant 0.000000e+00 : f32
    %10 = vector.broadcast %cst_4 : f32 to vector<8x128xf32>
    %11 = arith.subf %10, %9 : vector<8x128xf32>
    %12 = math.exp %11 : vector<8x128xf32>
    %13 = math.log1p %12 : vector<8x128xf32>
    %14 = arith.addf %8, %13 : vector<8x128xf32>
    %c0_5 = arith.constant 0 : index
    %c128 = arith.constant 128 : index
    %15 = vector.load %arg2[%c0_5, %c128] : memref<8x256xf32, #tpu.memory_space<vmem>>, vector<8x128xf32>
    %c0_6 = arith.constant 0 : index
    %c128_7 = arith.constant 128 : index
    %16 = vector.load %arg3[%c0_6, %c128_7] : memref<8x256xf32, #tpu.memory_space<vmem>>, vector<8x128xf32>
    %cst_8 = arith.constant 0.000000e+00 : f32
    %17 = vector.broadcast %cst_8 : f32 to vector<8x128xf32>
    %18 = arith.maximumf %15, %17 : vector<8x128xf32>
    %19 = arith.mulf %15, %16 : vector<8x128xf32>
    %20 = arith.subf %18, %19 : vector<8x128xf32>
    %21 = math.absf %15 : vector<8x128xf32>
    %cst_9 = arith.constant 0.000000e+00 : f32
    %22 = vector.broadcast %cst_9 : f32 to vector<8x128xf32>
    %23 = arith.subf %22, %21 : vector<8x128xf32>
    %24 = math.exp %23 : vector<8x128xf32>
    %25 = math.log1p %24 : vector<8x128xf32>
    %26 = arith.addf %20, %25 : vector<8x128xf32>
    %27 = arith.addf %14, %26 : vector<8x128xf32>
    %c0_10 = arith.constant 0 : index
    %c0_11 = arith.constant 0 : index
    %28 = vector.load %arg5[%c0_10, %c0_11] : memref<8x128xf32, #tpu.memory_space<vmem>>, vector<8x128xf32>
    %29 = arith.addf %28, %27 : vector<8x128xf32>
    %c0_12 = arith.constant 0 : index
    %c0_13 = arith.constant 0 : index
    %30 = vector.load %arg5[%c0_12, %c0_13] : memref<8x128xf32, #tpu.memory_space<vmem>>, vector<8x128xf32>
    tpu.vector_store %arg5[%c0_12, %c0_13], %29 {strides = array<i32>} : memref<8x128xf32, #tpu.memory_space<vmem>>, vector<8x128xf32>,
    %c0_i32_14 = arith.constant 0 : i32
    %31 = arith.cmpi eq, %arg1, %c0_i32_14 : i32
    %32 = arith.extui %31 : i1 to i32
    %c0_i32_15 = arith.constant 0 : i32
    %33 = arith.cmpi ne, %32, %c0_i32_15 : i32
    scf.if %33 {
      %c0_16 = arith.constant 0 : index
      %c0_17 = arith.constant 0 : index
      %34 = vector.load %arg5[%c0_16, %c0_17] : memref<8x128xf32, #tpu.memory_space<vmem>>, vector<8x128xf32>
      %cst_18 = arith.constant dense<0.000000e+00> : vector<8xf32>
      %35 = vector.multi_reduction <add>, %34, %cst_18 [1] : vector<8x128xf32> to vector<8xf32>
      %36 = vector.shape_cast %35 : vector<8xf32> to vector<8x1xf32>
      %cst_19 = arith.constant 3.906250e-03 : f32
      %37 = vector.broadcast %cst_19 : f32 to vector<8x1xf32>
      %38 = arith.mulf %36, %37 : vector<8x1xf32>
      %c0_20 = arith.constant 0 : index
      %c0_21 = arith.constant 0 : index
      %39 = vector.load %arg4[%c0_20, %c0_21] : memref<8x1xf32, #tpu.memory_space<vmem>>, vector<8x1xf32>
      tpu.vector_store %arg4[%c0_20, %c0_21], %38 {strides = array<i32>} : memref<8x1xf32, #tpu.memory_space<vmem>>, vector<8x1xf32>,
    } else {
    }
    return
  }
  func.func @transform_0(%arg0: i32, %arg1: i32) -> (i32, i32) {
    %c0_i32 = arith.constant 0 : i32
    return %arg0, %arg1 : i32, i32
  }
  func.func @transform_1(%arg0: i32, %arg1: i32) -> (i32, i32) {
    %c0_i32 = arith.constant 0 : i32
    return %arg0, %arg1 : i32, i32
  }
  func.func @transform_2(%arg0: i32, %arg1: i32) -> (i32, i32) {
    %c0_i32 = arith.constant 0 : i32
    %c0_i32_0 = arith.constant 0 : i32
    return %arg0, %c0_i32 : i32, i32
  }
}

</mosaic_0001>

<bundles_post_ra>
// kernel: tpu_custom_call.1
= control target key start
LH: loop header
LB: loop body
LE: loop exit
PB: predicated region body
PF: predicated region fallthrough
CT: control target
= control target key end

     0   :  { %7 = vsyncpa [#allocation4], 0  ;;  %s199_s0 = inlined_call_operand.hbm [shape: f32[8,256], index: 0, kind: input, shape index: {}]   ;;  %s200_s1 = inlined_call_operand.hbm [shape: f32[8,256], index: 1, kind: input, shape index: {}]   ;;  %s201_s2 = inlined_call_operand.vmem [shape: f32[8,1], index: 2, kind: output, shape index: {}]  }
   0x1   :  { %8 = vsyncpa [#allocation6], 0  ;;  %s155_s9 = smov [#allocation3]   ;;  %s156_s11 = smov [#allocation5]  }
   0x2   :  { %s15_s10 = sshll.u32 %s155_s9, 4  ;;  %s25_s12 = sshll.u32 %s156_s11, 4  ;;  %s16_s10 = int_to_ptr.vmem [resolvable:$true] %s15_s10  ;;  %s26_s12 = int_to_ptr.vmem [resolvable:$true] %s25_s12 }
   0x3   :  { %s107_s15 = scalar_lea.hbm %s199_s0, 256 }
   0x4   :  { %p108_p0 = scmp.ne.s32.totalorder %s199_s0, %s107_s15  ;;  %p111_p1 = scmp.lt.u32.totalorder %s107_s15, %s199_s0 }
   0x6   :  { %p113_p2 = pnand %p111_p1, %p108_p0 }
   0x8   :  { %116 = shalt.err (!%p113_p2)
}
   0x9   :  { %s117_s20 = scalar_lea.vmem %s16_s10, 256  ;;  %p122_p4 = scmp.lt.s32.totalorder %s16_s10, %s16_s10 }
   0xa   :  { %p118_p3 = scmp.ne.s32.totalorder %s16_s10, %s117_s20  ;;  %p123_p5 = scmp.lt.s32.totalorder %s117_s20, %s117_s20 }
   0xc   :  { %p124_p6 = por %p123_p5, %p122_p4 }
   0xe   :  { %p125_p7 = pnand %p124_p6, %p118_p3 }
  0x10   :  { %128 = shalt.err (!%p125_p7)
}
  0x11   :  { %18 = dma.hbm_to_vmem [thread:$0]  %s199_s0, 256, %s16_s10, [#allocation4]  }
  0x12   :  { %s129_s25 = scalar_lea.hbm %s200_s1, 256 }
  0x13   :  { %p130_p8 = scmp.ne.s32.totalorder %s200_s1, %s129_s25  ;;  %p133_p9 = scmp.lt.u32.totalorder %s129_s25, %s200_s1 }
  0x15   :  { %p135_p10 = pnand %p133_p9, %p130_p8 }
  0x17   :  { %138 = shalt.err (!%p135_p10)
}
  0x18   :  { %s139_s30 = scalar_lea.vmem %s26_s12, 256  ;;  %p144_p12 = scmp.lt.s32.totalorder %s26_s12, %s26_s12 }
  0x19   :  { %p140_p11 = scmp.ne.s32.totalorder %s26_s12, %s139_s30  ;;  %p145_p13 = scmp.lt.s32.totalorder %s139_s30, %s139_s30 }
  0x1b   :  { %p146_p0 = por %p145_p13, %p144_p12 }
  0x1d   :  { %p147_p1 = pnand %p146_p0, %p140_p11 }
  0x1f   :  { %150 = shalt.err (!%p147_p1)
}
  0x20   :  { %28 = dma.hbm_to_vmem [thread:$0]  %s200_s1, 256, %s26_s12, [#allocation6]  }
  0x21   :  { %151 = dma.done.wait [#allocation4], 256  }
  0x22   :  { %152 = vsyncadd [#allocation4], 4294967040 }
  0x23   :  { %153 = dma.done.wait [#allocation6], 256  }
  0x24   :  { %154 = vsyncadd [#allocation6], 4294967040  ;;  %v40_v0 = vld [vmem:[#allocation3] sm:$0xff]  ;;  %v59_v1 = vld [vmem:[#allocation3 + $0x8] sm:$0xff]  ;;  %vm89_vm2 = vcmask 7168  }
  0x25   :  { %v45_v2 = vand.u32 2147483647, %v40_v0  ;;  %v64_v3 = vand.u32 2147483647, %v59_v1  ;;  %v41_v14 = vld [vmem:[#allocation5] sm:$0xff]  ;;  %v60_v15 = vld [vmem:[#allocation5 + $0x8] sm:$0xff] }
  0x26   :  { %v42_v17 = vmax.f32 %v40_v0, 0.0  ;;  %v43_v18 = vmul.f32 %v41_v14, %v40_v0  ;;  %v61_v21 = vmax.f32 %v59_v1, 0.0  ;;  %v62_v22 = vmul.f32 %v60_v15, %v59_v1 }
  0x27   :  { %v46_v4 = vsub.f32 0.0, %v45_v2  ;;  %v65_v5 = vsub.f32 0.0, %v64_v3 }
  0x28   :  { %v44_v26 = vsub.f32 %v42_v17, %v43_v18  ;;  %v63_v30 = vsub.f32 %v61_v21, %v62_v22 }
  0x29   :  { %v47_v6 = vmul.f32 1.442695, %v46_v4  ;;  %v66_v7 = vmul.f32 1.442695, %v65_v5 }
  0x2b   :  { %99 = vpow2.f32 %v47_v6 }
  0x2c   :  { %101 = vpow2.f32 %v66_v7 }
  0x35   :  { %v100_v8 = vpop.eup %99 }
  0x36   :  { %v102_v9 = vpop.eup %101  ;;  %v49_v10 = vadd.f32 1.0, %v100_v8  ;;  %v52_v12 = vmul.f32 -0.5, %v100_v8  ;;  %v55_v19 = vand.u32 2147483647, %v100_v8 }
  0x37   :  { %v68_v11 = vadd.f32 1.0, %v102_v9  ;;  %v71_v13 = vmul.f32 -0.5, %v102_v9  ;;  %v74_v23 = vand.u32 2147483647, %v102_v9 }
  0x38   :  { %103 = vlog2.f32 %v49_v10  ;;  %v53_v16 = vadd.f32 1.0, %v52_v12  ;;  %vm56_vm0 = vcmp.lt.f32.partialorder %v55_v19, 0.0004427343 }
  0x39   :  { %105 = vlog2.f32 %v68_v11  ;;  %v72_v20 = vadd.f32 1.0, %v71_v13  ;;  %vm75_vm1 = vcmp.lt.f32.partialorder %v74_v23, 0.0004427343 }
  0x3a   :  { %v54_v24 = vmul.f32 %v100_v8, %v53_v16 }
  0x3b   :  { %v73_v27 = vmul.f32 %v102_v9, %v72_v20 }
  0x42   :  { %v104_v25 = vpop.eup %103 }
  0x43   :  { %v106_v28 = vpop.eup %105  ;;  %v51_v29 = vmul.f32 0.6931472, %v104_v25 }
  0x44   :  { %v70_v31 = vmul.f32 0.6931472, %v106_v28 }
  0x45   :  { %v57_v32 = vsel %vm56_vm0, %v54_v24, %v51_v29 }
  0x46   :  { %v58_v33 = vadd.f32 %v57_v32, %v44_v26  ;;  %v76_v34 = vsel %vm75_vm1, %v73_v27, %v70_v31 }
  0x47   :  { %v77_v35 = vadd.f32 %v76_v34, %v63_v30 }
  0x49   :  { %v78_v36 = vadd.f32 %v77_v35, %v58_v33 }
  0x4b   :  { %86 = vadd.xlane.f32.xlu0 %v78_v36 }
  0xd8   :  { %v87_v37 = vpop.xlane.xlu0 %86 }
  0xd9   :  { %v88_v38 = vmul.f32 0.00390625, %v87_v37 }
  0xdb   :  { %90 = vst.msk [vmem:[%s201_s2] sm:$0xff] %vm89_vm2, %v88_v38 }
  0xdc   :  { %95 = vsyncpa [#allocation4], 1 }
  0xdd   :  { %96 = vsyncpa [#allocation6], 1 }

</bundles_post_ra>
